<compile_context>
chip_gen: v7x
topology: tpu7x:2x2x1
jax: 0.10.0
libtpu: 0.0.40
codegen_flags: <defaults>
</compile_context>

<pallas_src>
import math

import jax
import jax.numpy as jnp
from jax.experimental import pallas as pl
from jax.experimental.pallas import tpu as pltpu


def _round_up(x: int, m: int) -> int:
    return ((x + m - 1) // m) * m


# ----------------------------------------------------------------------------
# Kernel
# ----------------------------------------------------------------------------
def _linear_kernel(x_ref, w_ref, b_ref, o_ref):
    # x_ref : [tm, tk]  activations
    # w_ref : [tk, tn]  weights, pre-transposed to [In, Out]
    # b_ref : [1,  tn]  bias
    # o_ref : [tm, tn]  f32 output tile; its index_map ignores the K grid
    #                   axis, so it stays resident in VMEM across K and
    #                   doubles as the accumulator.
    @pl.when(pl.program_id(2) == 0)
    def _():
        o_ref[...] = jnp.zeros_like(o_ref) + b_ref[...]   # broadcast bias init

    o_ref[...] += jnp.dot(
        x_ref[...], w_ref[...], preferred_element_type=jnp.float32
    )


# ----------------------------------------------------------------------------
# Tile selection
# ----------------------------------------------------------------------------
def _vmem_usage_bytes(tm: int, tn: int, tk: int) -> int:
    # double-buffered x, w, bias inputs + double-buffered f32 output tile
    return 4 * (2 * tm * tk + 2 * tk * tn + 2 * tn + 2 * tm * tn)


def _select_tiles(m: int, k: int, n: int, budget_bytes: int):
    tm = min(512, _round_up(m, 8))
    tn = min(1024, _round_up(n, 128))
    k_full = _round_up(k, 128)

    if m <= 128 and _vmem_usage_bytes(tm, 128, k_full) <= budget_bytes:
        # GEMV / small-batch: HBM-bound weight streaming.  Take the whole
        # padded K per step -> long contiguous weight DMAs, single K step.
        tk = k_full
        while _vmem_usage_bytes(tm, tn, tk) > budget_bytes and tn > 128:
            tn = _round_up(tn // 2, 128)
    else:
        tk = min(2048, k_full)
        while _vmem_usage_bytes(tm, tn, tk) > budget_bytes and tk > 128:
            tk = _round_up(tk // 2, 128)
        while _vmem_usage_bytes(tm, tn, tk) > budget_bytes and tn > 128:
            tn = _round_up(tn // 2, 128)
        while _vmem_usage_bytes(tm, tn, tk) > budget_bytes and tm > 8:
            tm = _round_up(tm // 2, 8)

    # Keep >= 2 steps along a parallel grid axis when possible so v7x can
    # shard the grid across its 2 TensorCores (harmless on v5e/v6e).
    if (_round_up(m, tm) // tm == 1
            and _round_up(n, tn) // tn == 1
            and tn >= 256):
        tn = _round_up(tn // 2, 128)

    return tm, tn, tk


def _vmem_capacity_bytes() -> int:
    try:
        return int(pltpu.get_tpu_info().vmem_capacity_bytes)
    except Exception:
        return 64 * 1024 * 1024   # conservative (v7x-sized) fallback


# ----------------------------------------------------------------------------
# Wrapper
# ----------------------------------------------------------------------------
def linear_forward(x, weights, bias):
    """Forward pass of the Linear layer.

    x       : [N, input_size] or [input_size]
    weights : [output_size, input_size]   (native PyTorch layout)
    bias    : [output_size]
    returns : [N, output_size] or [output_size], float32
    """
    squeeze = x.ndim == 1
    if squeeze:
        # torch.mv(W, x) + b  ==  (x[None, :] @ W.T + b)[0]
        x = x[None, :]

    # PyTorch module is float32; enforce it so tiling/dtype assumptions hold.
    x = x.astype(jnp.float32)
    weights = weights.astype(jnp.float32)
    bias = bias.astype(jnp.float32)

    m, k_dim = x.shape
    n_out, k_w = weights.shape
    if k_w != k_dim:
        raise ValueError(f"shape mismatch: x has K={k_dim}, weights has K={k_w}")

    vmem_cap = _vmem_capacity_bytes()
    budget = min(int(0.70 * vmem_cap), 48 * 1024 * 1024)
    vmem_limit = min(int(0.85 * vmem_cap), budget + (16 << 20))

    tm, tn, tk = _select_tiles(m, k_dim, n_out, budget)

    m_p = _round_up(m, tm)
    k_p = _round_up(k_dim, tk)
    n_p = _round_up(n_out, tn)

    # Activations / bias: cheap zero-pads (zeros along K contribute nothing).
    x_p = jnp.pad(x, ((0, m_p - m), (0, k_p - k_dim)))
    b_p = jnp.pad(bias, (0, n_p - n_out)).reshape(1, n_p)          # [1, Out_p]
    # Weights: single fused transpose+pad to [In_p, Out_p] so the kernel runs
    # the standard K-contracting MXU matmul (no per-tile XLU transpose).
    # TODO(synk): store parameters natively as [In, Out] to avoid this
    # per-call HBM copy of the weight matrix.
    w_p = jnp.pad(weights.T, ((0, k_p - k_dim), (0, n_p - n_out)))  # [In_p, Out_p]

    grid = (m_p // tm, n_p // tn, k_p // tk)

    cost = pl.CostEstimate(
        flops=2 * m_p * k_p * n_p,
        transcendentals=0,
        bytes_accessed=4 * (m_p * k_p * grid[1]      # x re-read per N tile
                            + k_p * n_p * grid[0]    # w re-read per M tile
                            + m_p * n_p              # output write
                            + n_p * grid[0]),        # bias re-read per M tile
    )

    out = pl.pallas_call(
        _linear_kernel,
        out_shape=jax.ShapeDtypeStruct((m_p, n_p), jnp.float32),
        grid_spec=pltpu.PrefetchScalarGridSpec(
            num_scalar_prefetch=0,
            grid=grid,
            in_specs=[
                pl.BlockSpec((tm, tk), lambda i, j, kk: (i, kk)),   # x tile
                pl.BlockSpec((tk, tn), lambda i, j, kk: (kk, j)),   # w.T tile
                pl.BlockSpec((1, tn), lambda i, j, kk: (0, j)),     # bias tile
            ],
            out_specs=pl.BlockSpec((tm, tn), lambda i, j, kk: (i, j)),
        ),
        compiler_params=pltpu.CompilerParams(
            dimension_semantics=("parallel", "parallel", "arbitrary"),
            vmem_limit_bytes=vmem_limit,
        ),
        cost_estimate=cost,
    )(x_p, w_p, b_p)

    out = out[:m, :n_out]
    if squeeze:
        out = out[0]
    return out


def init_linear_params(key, input_size, output_size):
    """Deterministic parameter init matching the PyTorch __init__."""
    std = math.sqrt(2.0 / (input_size + output_size))
    weights = std * jax.random.normal(
        key, (output_size, input_size), dtype=jnp.float32
    )
    bias = jnp.zeros((output_size,), dtype=jnp.float32)
    return weights, bias


if __name__ == "__main__":
    key = jax.random.PRNGKey(0)
    k_w, k_x, k_w2, k_x2, k_x3 = jax.random.split(key, 5)

    # --- Small demo shapes (matches the module's toy usage) -----------------
    input_size, output_size, batch = 32, 16, 8
    weights, bias = init_linear_params(k_w, input_size, output_size)
    x = jax.random.normal(k_x, (batch, input_size), dtype=jnp.float32)

    y = jax.block_until_ready(linear_forward(x, weights, bias))        # 2D path
    y1 = jax.block_until_ready(linear_forward(x[0], weights, bias))    # 1D (torch.mv) path

    ref2 = x @ weights.T + bias
    ref1 = weights @ x[0] + bias
    assert y.shape == (batch, output_size)
    assert y1.shape == (output_size,)
    assert jnp.allclose(y, ref2, atol=1e-5, rtol=1e-5)
    assert jnp.allclose(y1, ref1, atol=1e-5, rtol=1e-5)

    # --- Ragged shape, small batch: exercises the GEMV (full-K) path --------
    in2, out2, b2 = 1100, 200, 20
    w2, bias2 = init_linear_params(k_w2, in2, out2)
    x2 = jax.random.normal(k_x2, (b2, in2), dtype=jnp.float32)
    y2 = jax.block_until_ready(linear_forward(x2, w2, bias2))
    ref3 = x2 @ w2.T + bias2
    assert y2.shape == (b2, out2)
    assert jnp.allclose(y2, ref3, atol=1e-4, rtol=1e-4)

    # --- Larger batch: exercises the general tiled-GEMM path ----------------
    b3 = 300
    x3 = jax.random.normal(k_x3, (b3, in2), dtype=jnp.float32)
    y3 = jax.block_until_ready(linear_forward(x3, w2, bias2))
    ref4 = x3 @ w2.T + bias2
    assert y3.shape == (b3, out2)
    assert jnp.allclose(y3, ref4, atol=1e-4, rtol=1e-4)

    print("KERNEL_OK")
</pallas_src>

<mosaic_0001>
module attributes {stable_mosaic.version = 11 : i64} {
  func.func @_linear_kernel(%arg0: i32, %arg1: i32, %arg2: i32, %arg3: memref<8x128xf32, #tpu.memory_space<vmem>>, %arg4: memref<128x128xf32, #tpu.memory_space<vmem>>, %arg5: memref<1x128xf32, #tpu.memory_space<vmem>>, %arg6: memref<8x128xf32, #tpu.memory_space<vmem>>) attributes {dimension_semantics = [#tpu.dimension_semantics<parallel>, #tpu.dimension_semantics<parallel>, #tpu.dimension_semantics<arbitrary>], iteration_bounds = array<i64: 1, 1, 1>, scalar_prefetch = 0 : i64, scratch_operands = 0 : i64, tpu.core_type = #tpu.core_type<tc>, window_params = [{transform_indices = @transform_0, window_bounds = array<i64: 8, 128>}, {transform_indices = @transform_1, window_bounds = array<i64: 128, 128>}, {transform_indices = @transform_2, window_bounds = array<i64: 1, 128>}, {transform_indices = @transform_3, window_bounds = array<i64: 8, 128>}]} {
    %c0_i32 = arith.constant 0 : i32
    %0 = arith.cmpi eq, %arg2, %c0_i32 : i32
    %1 = arith.extui %0 : i1 to i32
    %c0_i32_0 = arith.constant 0 : i32
    %2 = arith.cmpi ne, %1, %c0_i32_0 : i32
    scf.if %2 {
      %cst_8 = arith.constant 0.000000e+00 : f32
      %9 = vector.broadcast %cst_8 : f32 to vector<8x128xf32>
      %c0_9 = arith.constant 0 : index
      %c0_10 = arith.constant 0 : index
      %10 = vector.load %arg5[%c0_9, %c0_10] : memref<1x128xf32, #tpu.memory_space<vmem>>, vector<1x128xf32>
      %11 = vector.broadcast %10 : vector<1x128xf32> to vector<8x128xf32>
      %12 = arith.addf %9, %11 : vector<8x128xf32>
      %c0_11 = arith.constant 0 : index
      %c0_12 = arith.constant 0 : index
      %13 = vector.load %arg6[%c0_11, %c0_12] : memref<8x128xf32, #tpu.memory_space<vmem>>, vector<8x128xf32>
      tpu.vector_store %arg6[%c0_11, %c0_12], %12 {strides = array<i32>} : memref<8x128xf32, #tpu.memory_space<vmem>>, vector<8x128xf32>,
    } else {
    }
    %c0 = arith.constant 0 : index
    %c0_1 = arith.constant 0 : index
    %3 = vector.load %arg6[%c0, %c0_1] : memref<8x128xf32, #tpu.memory_space<vmem>>, vector<8x128xf32>
    %c0_2 = arith.constant 0 : index
    %c0_3 = arith.constant 0 : index
    %4 = vector.load %arg3[%c0_2, %c0_3] : memref<8x128xf32, #tpu.memory_space<vmem>>, vector<8x128xf32>
    %c0_4 = arith.constant 0 : index
    %c0_5 = arith.constant 0 : index
    %5 = vector.load %arg4[%c0_4, %c0_5] : memref<128x128xf32, #tpu.memory_space<vmem>>, vector<128x128xf32>
    %cst = arith.constant dense<0.000000e+00> : vector<8x128xf32>
    %6 = tpu.matmul %4, %5, %cst {dimension_numbers = #tpu.dot_dimension_numbers<[1], [0], [0], [1], [0, 0, 1, 1], [], []>} : vector<8x128xf32>, vector<128x128xf32>, vector<8x128xf32> -> vector<8x128xf32>
    %7 = arith.addf %3, %6 : vector<8x128xf32>
    %c0_6 = arith.constant 0 : index
    %c0_7 = arith.constant 0 : index
    %8 = vector.load %arg6[%c0_6, %c0_7] : memref<8x128xf32, #tpu.memory_space<vmem>>, vector<8x128xf32>
    tpu.vector_store %arg6[%c0_6, %c0_7], %7 {strides = array<i32>} : memref<8x128xf32, #tpu.memory_space<vmem>>, vector<8x128xf32>,
    return
  }
  func.func @transform_0(%arg0: i32, %arg1: i32, %arg2: i32) -> (i32, i32) {
    %c0_i32 = arith.constant 0 : i32
    return %arg0, %arg2 : i32, i32
  }
  func.func @transform_1(%arg0: i32, %arg1: i32, %arg2: i32) -> (i32, i32) {
    %c0_i32 = arith.constant 0 : i32
    return %arg2, %arg1 : i32, i32
  }
  func.func @transform_2(%arg0: i32, %arg1: i32, %arg2: i32) -> (i32, i32) {
    %c0_i32 = arith.constant 0 : i32
    %c0_i32_0 = arith.constant 0 : i32
    return %c0_i32, %arg1 : i32, i32
  }
  func.func @transform_3(%arg0: i32, %arg1: i32, %arg2: i32) -> (i32, i32) {
    %c0_i32 = arith.constant 0 : i32
    return %arg0, %arg1 : i32, i32
  }
}

</mosaic_0001>

<bundles_post_ra>
// kernel: tpu_custom_call.1
= control target key start
LH: loop header
LB: loop body
LE: loop exit
PB: predicated region body
PF: predicated region fallthrough
CT: control target
= control target key end

     0   :  { %8 = vsyncpa [#allocation3], 0  ;;  %s391_s0 = inlined_call_operand.hbm [shape: f32[8,128], index: 0, kind: input, shape index: {}]   ;;  %s392_s1 = inlined_call_operand.hbm [shape: f32[128,128], index: 1, kind: input, shape index: {}]   ;;  %s393_s2 = inlined_call_operand.vmem [shape: f32[1,128], index: 2, kind: input, shape index: {}]   ;;  %s394_s3 = inlined_call_operand.hbm [shape: f32[8,128], index: 3, kind: output, shape index: {}]  }
   0x1   :  { %9 = vsyncpa [#allocation6], 0 }
   0x2   :  { %10 = vsyncpa [#allocation4], 0  ;;  %s317_s12 = smov [#allocation2]   ;;  %s318_s14 = smov [#allocation5]  }
   0x3   :  { %s17_s13 = sshll.u32 %s317_s12, 4  ;;  %s26_s15 = sshll.u32 %s318_s14, 4  ;;  %s18_s13 = int_to_ptr.vmem [resolvable:$true] %s17_s13  ;;  %s345_s15 = int_to_ptr.vmem [resolvable:$true] %s26_s15 }
   0x4   :  { %s245_s18 = scalar_lea.hbm %s391_s0, 128 }
   0x5   :  { %p246_p0 = scmp.ne.s32.totalorder %s391_s0, %s245_s18  ;;  %p249_p1 = scmp.lt.u32.totalorder %s245_s18, %s391_s0 }
   0x7   :  { %p251_p2 = pnand %p249_p1, %p246_p0 }
   0x9   :  { %254 = shalt.err (!%p251_p2)
}
   0xa   :  { %s255_s23 = scalar_lea.vmem %s18_s13, 128  ;;  %p260_p4 = scmp.lt.s32.totalorder %s18_s13, %s18_s13 }
   0xb   :  { %p256_p3 = scmp.ne.s32.totalorder %s18_s13, %s255_s23  ;;  %p261_p5 = scmp.lt.s32.totalorder %s255_s23, %s255_s23 }
   0xd   :  { %p262_p6 = por %p261_p5, %p260_p4 }
   0xf   :  { %p263_p7 = pnand %p262_p6, %p256_p3 }
  0x11   :  { %266 = shalt.err (!%p263_p7)
}
  0x12   :  { %20 = dma.hbm_to_vmem [thread:$0]  %s391_s0, 128, %s18_s13, [#allocation3]  }
  0x13   :  { %s267_s28 = scalar_lea.hbm %s392_s1, 2048 }
  0x14   :  { %p268_p8 = scmp.ne.s32.totalorder %s392_s1, %s267_s28  ;;  %p271_p9 = scmp.lt.u32.totalorder %s267_s28, %s392_s1 }
  0x16   :  { %p273_p10 = pnand %p271_p9, %p268_p8 }
  0x18   :  { %276 = shalt.err (!%p273_p10)
}
  0x19   :  { %s277_s6 = scalar_lea.vmem %s345_s15, 2048  ;;  %p282_p12 = scmp.lt.s32.totalorder %s345_s15, %s345_s15 }
  0x1a   :  { %p278_p11 = scmp.ne.s32.totalorder %s345_s15, %s277_s6  ;;  %p283_p13 = scmp.lt.s32.totalorder %s277_s6, %s277_s6 }
  0x1c   :  { %p284_p0 = por %p283_p13, %p282_p12 }
  0x1e   :  { %p285_p1 = pnand %p284_p0, %p278_p11 }
  0x20   :  { %288 = shalt.err (!%p285_p1)
}
  0x21   :  { %s319_s0 = smov 128   ;;  %s320_s7 = smov 8  }
  0x22   :  { %32 = dma.hbm_to_vmem [thread:$0]  %s392_s1, 2048, %s345_s15, [#allocation6], %s319_s0, %s319_s0, %s320_s7  }
  0x23   :  { %311 = dma.done.wait [#allocation3], 128  }
  0x24   :  { %312 = vsyncadd [#allocation3], 4294967168 }
  0x25   :  { %313 = dma.done.wait [#allocation6], 2048  }
  0x26   :  { %314 = vsyncadd [#allocation6], 4294965248  ;;  %v321_v0 = vmov 0.0|0.0   ;;  %vm322_vm0 = vmmov 0   ;;  %v323_v1 = vmov 0.0   ;;  %v56_v2 = vld [vmem:[#allocation5] sm:$0xff] }
  0x27   :  { %213 = vmatprep.subr.bf16.mxu0 %v321_v0  ;;  %210 = vmatprep.mubr.msk.f32.mxu0 %vm322_vm0, %v323_v1  ;;  %v57_v3 = vld [vmem:[#allocation5 + $0x8] sm:$0xff]  ;;  %v58_v4 = vld [vmem:[#allocation5 + $0x10] sm:$0xff]  ;;  %v59_v6 = vld [vmem:[#allocation5 + $0x18] sm:$0xff]  ;;  %s324_s11 = smov [#allocation7]  }
  0x28   :  { %v214_v5 = vpack.c.bf16 %v57_v3, %v56_v2  ;;  %v217_v7 = vpack.c.bf16 %v59_v6, %v58_v4  ;;  %v60_v8 = vld [vmem:[#allocation5 + $0x20] sm:$0xff]  ;;  %v61_v9 = vld [vmem:[#allocation5 + $0x28] sm:$0xff]  ;;  %v62_v11 = vld [vmem:[#allocation5 + $0x30] sm:$0xff]  ;;  %s150_s12 = sshll.u32 %s324_s11, 4  ;;  %s151_s12 = int_to_ptr.vmem [resolvable:$true] %s150_s12 }
  0x29   :  { %v220_v10 = vpack.c.bf16 %v61_v9, %v60_v8  ;;  %v63_v12 = vld [vmem:[#allocation5 + $0x38] sm:$0xff]  ;;  %v64_v14 = vld [vmem:[#allocation5 + $0x40] sm:$0xff]  ;;  %v65_v15 = vld [vmem:[#allocation5 + $0x48] sm:$0xff]  ;;  %s289_s13 = scalar_lea.vmem %s151_s12, 128  ;;  %p294_p3 = scmp.lt.s32.totalorder %s151_s12, %s151_s12 }
  0x2a   :  { %215 = vmatpush3.bf16.msra.mxu0 %v214_v5  ;;  %v223_v13 = vpack.c.bf16 %v63_v12, %v62_v11  ;;  %v226_v16 = vpack.c.bf16 %v65_v15, %v64_v14  ;;  %v66_v17 = vld [vmem:[#allocation5 + $0x50] sm:$0xff]  ;;  %v67_v18 = vld [vmem:[#allocation5 + $0x58] sm:$0xff]  ;;  %v68_v20 = vld [vmem:[#allocation5 + $0x60] sm:$0xff]  ;;  %p290_p2 = scmp.ne.s32.totalorder %s151_s12, %s289_s13  ;;  %p295_p4 = scmp.lt.s32.totalorder %s289_s13, %s289_s13 }
  0x2b   :  { %216 = vmatprep.subr.bf16.mxu0 %v321_v0  ;;  %v229_v19 = vpack.c.bf16 %v67_v18, %v66_v17  ;;  %v69_v21 = vld [vmem:[#allocation5 + $0x68] sm:$0xff]  ;;  %v70_v23 = vld [vmem:[#allocation5 + $0x70] sm:$0xff]  ;;  %v71_v24 = vld [vmem:[#allocation5 + $0x78] sm:$0xff] }
  0x2c   :  { %v232_v22 = vpack.c.bf16 %v69_v21, %v68_v20  ;;  %v235_v25 = vpack.c.bf16 %v71_v24, %v70_v23  ;;  %v55_v26 = vld [vmem:[#allocation2] sm:$0xff]  ;;  %p296_p5 = por %p295_p4, %p294_p3 }
  0x2d   :  { %v160_v27 = vld [vmem:[%s393_s2] ss:$0 sm:$0xff] }
  0x2e   :  { %218 = vmatpush3.bf16.msra.mxu0 %v217_v7  ;;  %p297_p6 = pnand %p296_p5, %p290_p2 }
  0x2f   :  { %219 = vmatprep.subr.bf16.mxu0 %v321_v0 }
  0x32   :  { %221 = vmatpush3.bf16.msra.mxu0 %v220_v10 }
  0x33   :  { %222 = vmatprep.subr.bf16.mxu0 %v321_v0 }
  0x36   :  { %224 = vmatpush3.bf16.msra.mxu0 %v223_v13 }
  0x37   :  { %225 = vmatprep.subr.bf16.mxu0 %v321_v0 }
  0x3a   :  { %227 = vmatpush3.bf16.msra.mxu0 %v226_v16 }
  0x3b   :  { %228 = vmatprep.subr.bf16.mxu0 %v321_v0 }
  0x3e   :  { %230 = vmatpush3.bf16.msra.mxu0 %v229_v19 }
  0x3f   :  { %231 = vmatprep.subr.bf16.mxu0 %v321_v0 }
  0x42   :  { %233 = vmatpush3.bf16.msra.mxu0 %v232_v22 }
  0x43   :  { %234 = vmatprep.subr.bf16.mxu0 %v321_v0 }
  0x46   :  { %236 = vmatpush3.bf16.msra.mxu0 %v235_v25 }
  0x49   :  { %211 = vmatmul.mubr.f32.vlgmr.msra.gmra.mrb[0].mxu0 %v55_v26 }
 0x11c   :  { %v138_v28 = vpop.f32.mrb[0].mxu0 }
 0x11d   :  { %v142_v29 = vadd.f32 %v160_v27, %v138_v28  ;;  %v212_v30 = vpop.f32.mrb[1].mxu0 }
 0x11f   :  { %143 = vst [vmem:[#allocation7] sm:$0xff] %v142_v29 }
 0x120   :  { %300 = shalt.err (!%p297_p6)
}
 0x121   :  { %s301_s16 = scalar_lea.hbm %s394_s3, 128 }
 0x122   :  { %p302_p7 = scmp.ne.s32.totalorder %s394_s3, %s301_s16  ;;  %p305_p8 = scmp.lt.u32.totalorder %s301_s16, %s394_s3 }
 0x124   :  { %p307_p9 = pnand %p305_p8, %p302_p7 }
 0x126   :  { %310 = shalt.err (!%p307_p9)
}
 0x127   :  { %153 = dma.vmem_to_hbm [thread:$0]  %s151_s12, 128, %s394_s3, [#allocation4]  }
 0x128   :  { %315 = dma.done.wait [#allocation4], 128  }
 0x129   :  { %316 = vsyncadd [#allocation4], 4294967168 }
 0x12a   :  { %157 = vsyncpa [#allocation3], 1 }
 0x12b   :  { %158 = vsyncpa [#allocation6], 1 }
 0x12c   :  { %159 = vsyncpa [#allocation4], 1 }

</bundles_post_ra>
